<compile_context>
chip_gen: v7x
topology: tpu7x:2x2x1
jax: 0.10.0
libtpu: 0.0.40
codegen_flags: <defaults>
</compile_context>

<pallas_src>
import jax
import jax.numpy as jnp
from jax.experimental import pallas as pl
from jax.experimental.pallas import tpu as pltpu

LEAKY_SLOPE = 0.01  # PyTorch nn.LeakyReLU default negative_slope
LANE = 128          # TPU lane width


def _round_up(n, m):
    return ((n + m - 1) // m) * m


def _leaky_relu(x):
    return jnp.where(x > 0, x, LEAKY_SLOPE * x)


def latent_encoder_kernel(x_ref, w1_ref, b1_ref, w2_ref, b2_ref, w3_ref, b3_ref, o_ref):
    # Layer 1: Linear -> LeakyReLU -> (Dropout = identity at eval).
    # x arrives bf16, K = real feature dim (Mosaic pads the contraction).
    h = jnp.dot(x_ref[...], w1_ref[...], preferred_element_type=jnp.float32) + b1_ref[...]
    h = _leaky_relu(h)
    # Layer 2: Linear -> LeakyReLU -> (Dropout = identity at eval)
    h = jnp.dot(h.astype(jnp.bfloat16), w2_ref[...],
                preferred_element_type=jnp.float32) + b2_ref[...]
    h = _leaky_relu(h)
    # Layer 3: Linear. Dense 128-lane bf16 store (logical r_dim sliced in wrapper).
    o_ref[...] = (jnp.dot(h.astype(jnp.bfloat16), w3_ref[...],
                          preferred_element_type=jnp.float32) + b3_ref[...]
                  ).astype(o_ref.dtype)


def latent_encoder(x, padded_params, out_dim, *, block_b=2048):
    """x: [B, 3*embed_size + 1] (f32)  ->  [B, out_dim] (f32).

    `padded_params` come from `pad_params` (lane-aligned hidden/out dims,
    bf16 weights, f32 biases).
    """
    w1, b1, w2, b2, w3, b3 = padded_params
    B, F = x.shape
    assert w1.shape[0] == F, (w1.shape, F)
    h_pad = max(w1.shape[1], w2.shape[1])
    r_pad = w3.shape[1]

    # Batch tile: multiple of 8 (sublane), capped at block_b.  Cap again so the
    # grid has >= 2 steps (feeds both v7x TensorCores via "parallel" semantics).
    TB = min(block_b, _round_up(B, 8))
    if B > 8:
        TB = min(TB, _round_up(pl.cdiv(B, 2), 8))
    B_pad = _round_up(B, TB)

    # Batch-only pad, cast to bf16 before padding so the HBM staging array is
    # half-width.  Feature dim is left at its natural size (no padding zeros).
    x_p = x.astype(jnp.bfloat16)
    if B_pad != B:
        x_p = jnp.pad(x_p, ((0, B_pad - B), (0, 0)))

    # Grid-invariant index_map -> weights/biases stay VMEM-resident across steps.
    resident = lambda arr: pl.BlockSpec(arr.shape, lambda i: (0, 0))

    # Accurate VMEM budget: double-buffered x/out tiles + params + f32
    # intermediates, x2 headroom, 16 MiB floor, capped under v7x's 64 MiB.
    param_bytes = sum(int(p.size) * p.dtype.itemsize for p in padded_params)
    est = (2 * TB * F * 2            # bf16 x tiles (double-buffered)
           + 2 * TB * r_pad * 2      # bf16 out tiles (double-buffered)
           + 2 * param_bytes         # weights/biases (worst-case 2 buffers)
           + 4 * TB * h_pad * 4)     # f32 intermediates / matmul temporaries
    vmem_limit = max(16 << 20, min(2 * est, 56 << 20))

    out = pl.pallas_call(
        latent_encoder_kernel,
        out_shape=jax.ShapeDtypeStruct((B_pad, r_pad), jnp.bfloat16),
        grid_spec=pltpu.PrefetchScalarGridSpec(
            num_scalar_prefetch=0,
            grid=(B_pad // TB,),
            in_specs=[
                pl.BlockSpec((TB, F), lambda i: (i, 0)),   # pipelined bf16 x tile
                resident(w1), resident(b1),
                resident(w2), resident(b2),
                resident(w3), resident(b3),
            ],
            out_specs=pl.BlockSpec((TB, r_pad), lambda i: (i, 0)),  # lane-dense out
        ),
        compiler_params=pltpu.CompilerParams(
            dimension_semantics=("parallel",),   # shard batch steps across TCs (v7x)
            vmem_limit_bytes=int(vmem_limit),
        ),
    )(x_p, w1, b1, w2, b2, w3, b3)

    # Only the small logical slice is read back / cast to f32.
    return out[:B, :out_dim].astype(jnp.float32)


def init_params(key, embed_size, num_hidden1, num_hidden2, r_dim):
    """Logical (unpadded, f32) params mimicking the PyTorch module's __init__.

    Weights: xavier_normal_ (std = sqrt(2 / (fan_in + fan_out))), stored [in, out].
    Biases:  PyTorch Linear default uniform(-1/sqrt(fan_in), 1/sqrt(fan_in)), [1, out].
    """
    in_dim = 3 * embed_size + 1
    dims = [(in_dim, num_hidden1), (num_hidden1, num_hidden2), (num_hidden2, r_dim)]
    params = []
    for (fan_in, fan_out) in dims:
        key, kw, kb = jax.random.split(key, 3)
        std = (2.0 / (fan_in + fan_out)) ** 0.5
        w = std * jax.random.normal(kw, (fan_in, fan_out), dtype=jnp.float32)
        bound = 1.0 / (fan_in ** 0.5)
        b = jax.random.uniform(kb, (1, fan_out), minval=-bound, maxval=bound, dtype=jnp.float32)
        params += [w, b]
    return tuple(params)


def pad_params(params):
    """Lane-align hidden/output dims (128); weights -> bf16, biases stay f32.

    w1's fan_in is NOT padded (it contracts against the unpadded x features);
    w2/w3 fan_in is padded to match the 128-wide padded activations, with zero
    padding so the extra activation columns contribute nothing.
    """
    w1, b1, w2, b2, w3, b3 = params

    def pad_w(w, pad_in):
        fi, fo = w.shape
        fi_p = _round_up(fi, LANE) if pad_in else fi
        out = jnp.zeros((fi_p, _round_up(fo, LANE)), jnp.bfloat16)
        return out.at[:fi, :fo].set(w.astype(jnp.bfloat16))

    def pad_b(b):
        fo = b.shape[-1]
        out = jnp.zeros((1, _round_up(fo, LANE)), jnp.float32)
        return out.at[:, :fo].set(b.reshape(1, -1).astype(jnp.float32))

    return (pad_w(w1, False), pad_b(b1),
            pad_w(w2, True), pad_b(b2),
            pad_w(w3, True), pad_b(b3))


def reference_forward(x, params):
    w1, b1, w2, b2, w3, b3 = params
    h = _leaky_relu(x @ w1 + b1)
    h = _leaky_relu(h @ w2 + b2)
    return h @ w3 + b3


if __name__ == "__main__":
    # Small shapes consistent with the module's forward:
    # embed_size=8 -> input feature dim = 3*8 + 1 = 25
    embed_size, num_hidden1, num_hidden2, r_dim = 8, 32, 16, 8
    batch = 128

    key = jax.random.PRNGKey(0)
    key, kx = jax.random.split(key)
    x = jax.random.normal(kx, (batch, 3 * embed_size + 1), dtype=jnp.float32)

    params = init_params(key, embed_size, num_hidden1, num_hidden2, r_dim)
    padded_params = pad_params(params)

    # Default block_b: at batch=128 the >=2-step cap gives TB=64 / grid=2,
    # which also exercises the pipelined path.
    out = latent_encoder(x, padded_params, r_dim)
    out = jax.block_until_ready(out)

    ref = reference_forward(x, params)
    assert out.shape == (batch, r_dim), out.shape
    max_err = float(jnp.max(jnp.abs(out - ref)))
    # bf16 MXU inputs + bf16 output store (f32 accumulation) -> compare against
    # the f32 reference with a loosened tolerance.
    assert jnp.allclose(out, ref, atol=5e-2, rtol=5e-2), max_err

    print("KERNEL_OK")
</pallas_src>

<mosaic_0001>
module attributes {stable_mosaic.version = 11 : i64} {
  func.func @latent_encoder_kernel(%arg0: i32, %arg1: memref<64x25xbf16, #tpu.memory_space<vmem>>, %arg2: memref<25x128xbf16, #tpu.memory_space<vmem>>, %arg3: memref<1x128xf32, #tpu.memory_space<vmem>>, %arg4: memref<128x128xbf16, #tpu.memory_space<vmem>>, %arg5: memref<1x128xf32, #tpu.memory_space<vmem>>, %arg6: memref<128x128xbf16, #tpu.memory_space<vmem>>, %arg7: memref<1x128xf32, #tpu.memory_space<vmem>>, %arg8: memref<64x128xbf16, #tpu.memory_space<vmem>>) attributes {dimension_semantics = [#tpu.dimension_semantics<parallel>], iteration_bounds = array<i64: 2>, scalar_prefetch = 0 : i64, scratch_operands = 0 : i64, tpu.core_type = #tpu.core_type<tc>, window_params = [{transform_indices = @transform_0, window_bounds = array<i64: 64, 25>}, {pipeline_mode = #tpu.pipeline_mode<synchronous>, transform_indices = @transform_1, window_bounds = array<i64: 25, 128>}, {pipeline_mode = #tpu.pipeline_mode<synchronous>, transform_indices = @transform_2, window_bounds = array<i64: 1, 128>}, {pipeline_mode = #tpu.pipeline_mode<synchronous>, transform_indices = @transform_3, window_bounds = array<i64: 128, 128>}, {pipeline_mode = #tpu.pipeline_mode<synchronous>, transform_indices = @transform_4, window_bounds = array<i64: 1, 128>}, {pipeline_mode = #tpu.pipeline_mode<synchronous>, transform_indices = @transform_5, window_bounds = array<i64: 128, 128>}, {pipeline_mode = #tpu.pipeline_mode<synchronous>, transform_indices = @transform_6, window_bounds = array<i64: 1, 128>}, {transform_indices = @transform_7, window_bounds = array<i64: 64, 128>}]} {
    %c0 = arith.constant 0 : index
    %c0_0 = arith.constant 0 : index
    %0 = vector.load %arg1[%c0, %c0_0] : memref<64x25xbf16, #tpu.memory_space<vmem>>, vector<64x25xbf16>
    %c0_1 = arith.constant 0 : index
    %c0_2 = arith.constant 0 : index
    %1 = vector.load %arg2[%c0_1, %c0_2] : memref<25x128xbf16, #tpu.memory_space<vmem>>, vector<25x128xbf16>
    %cst = arith.constant dense<0.000000e+00> : vector<64x128xf32>
    %2 = tpu.matmul %0, %1, %cst {dimension_numbers = #tpu.dot_dimension_numbers<[1], [0], [0], [1], [0, 0, 1, 1], [], []>} : vector<64x25xbf16>, vector<25x128xbf16>, vector<64x128xf32> -> vector<64x128xf32>
    %c0_3 = arith.constant 0 : index
    %c0_4 = arith.constant 0 : index
    %3 = vector.load %arg3[%c0_3, %c0_4] : memref<1x128xf32, #tpu.memory_space<vmem>>, vector<1x128xf32>
    %4 = vector.broadcast %3 : vector<1x128xf32> to vector<64x128xf32>
    %5 = arith.addf %2, %4 : vector<64x128xf32>
    %cst_5 = arith.constant 0.000000e+00 : f32
    %6 = vector.broadcast %cst_5 : f32 to vector<64x128xf32>
    %7 = arith.cmpf ogt, %5, %6 : vector<64x128xf32>
    %cst_6 = arith.constant 0.00999999977 : f32
    %8 = vector.broadcast %cst_6 : f32 to vector<64x128xf32>
    %9 = arith.mulf %8, %5 : vector<64x128xf32>
    %10 = arith.select %7, %5, %9 : vector<64x128xi1>, vector<64x128xf32>
    %11 = arith.truncf %10 : vector<64x128xf32> to vector<64x128xbf16>
    %c0_7 = arith.constant 0 : index
    %c0_8 = arith.constant 0 : index
    %12 = vector.load %arg4[%c0_7, %c0_8] : memref<128x128xbf16, #tpu.memory_space<vmem>>, vector<128x128xbf16>
    %cst_9 = arith.constant dense<0.000000e+00> : vector<64x128xf32>
    %13 = tpu.matmul %11, %12, %cst_9 {dimension_numbers = #tpu.dot_dimension_numbers<[1], [0], [0], [1], [0, 0, 1, 1], [], []>} : vector<64x128xbf16>, vector<128x128xbf16>, vector<64x128xf32> -> vector<64x128xf32>
    %c0_10 = arith.constant 0 : index
    %c0_11 = arith.constant 0 : index
    %14 = vector.load %arg5[%c0_10, %c0_11] : memref<1x128xf32, #tpu.memory_space<vmem>>, vector<1x128xf32>
    %15 = vector.broadcast %14 : vector<1x128xf32> to vector<64x128xf32>
    %16 = arith.addf %13, %15 : vector<64x128xf32>
    %cst_12 = arith.constant 0.000000e+00 : f32
    %17 = vector.broadcast %cst_12 : f32 to vector<64x128xf32>
    %18 = arith.cmpf ogt, %16, %17 : vector<64x128xf32>
    %cst_13 = arith.constant 0.00999999977 : f32
    %19 = vector.broadcast %cst_13 : f32 to vector<64x128xf32>
    %20 = arith.mulf %19, %16 : vector<64x128xf32>
    %21 = arith.select %18, %16, %20 : vector<64x128xi1>, vector<64x128xf32>
    %22 = arith.truncf %21 : vector<64x128xf32> to vector<64x128xbf16>
    %c0_14 = arith.constant 0 : index
    %c0_15 = arith.constant 0 : index
    %23 = vector.load %arg6[%c0_14, %c0_15] : memref<128x128xbf16, #tpu.memory_space<vmem>>, vector<128x128xbf16>
    %cst_16 = arith.constant dense<0.000000e+00> : vector<64x128xf32>
    %24 = tpu.matmul %22, %23, %cst_16 {dimension_numbers = #tpu.dot_dimension_numbers<[1], [0], [0], [1], [0, 0, 1, 1], [], []>} : vector<64x128xbf16>, vector<128x128xbf16>, vector<64x128xf32> -> vector<64x128xf32>
    %c0_17 = arith.constant 0 : index
    %c0_18 = arith.constant 0 : index
    %25 = vector.load %arg7[%c0_17, %c0_18] : memref<1x128xf32, #tpu.memory_space<vmem>>, vector<1x128xf32>
    %26 = vector.broadcast %25 : vector<1x128xf32> to vector<64x128xf32>
    %27 = arith.addf %24, %26 : vector<64x128xf32>
    %28 = arith.truncf %27 : vector<64x128xf32> to vector<64x128xbf16>
    %c0_19 = arith.constant 0 : index
    %c0_20 = arith.constant 0 : index
    %29 = vector.load %arg8[%c0_19, %c0_20] : memref<64x128xbf16, #tpu.memory_space<vmem>>, vector<64x128xbf16>
    tpu.vector_store %arg8[%c0_19, %c0_20], %28 {strides = array<i32>} : memref<64x128xbf16, #tpu.memory_space<vmem>>, vector<64x128xbf16>,
    return
  }
  func.func @transform_0(%arg0: i32) -> (i32, i32) {
    %c0_i32 = arith.constant 0 : i32
    %c0_i32_0 = arith.constant 0 : i32
    return %arg0, %c0_i32 : i32, i32
  }
  func.func @transform_1(%arg0: i32) -> (i32, i32) {
    %c0_i32 = arith.constant 0 : i32
    %c0_i32_0 = arith.constant 0 : i32
    %c0_i32_1 = arith.constant 0 : i32
    return %c0_i32, %c0_i32_0 : i32, i32
  }
  func.func @transform_2(%arg0: i32) -> (i32, i32) {
    %c0_i32 = arith.constant 0 : i32
    %c0_i32_0 = arith.constant 0 : i32
    %c0_i32_1 = arith.constant 0 : i32
    return %c0_i32, %c0_i32_0 : i32, i32
  }
  func.func @transform_3(%arg0: i32) -> (i32, i32) {
    %c0_i32 = arith.constant 0 : i32
    %c0_i32_0 = arith.constant 0 : i32
    %c0_i32_1 = arith.constant 0 : i32
    return %c0_i32, %c0_i32_0 : i32, i32
  }
  func.func @transform_4(%arg0: i32) -> (i32, i32) {
    %c0_i32 = arith.constant 0 : i32
    %c0_i32_0 = arith.constant 0 : i32
    %c0_i32_1 = arith.constant 0 : i32
    return %c0_i32, %c0_i32_0 : i32, i32
  }
  func.func @transform_5(%arg0: i32) -> (i32, i32) {
    %c0_i32 = arith.constant 0 : i32
    %c0_i32_0 = arith.constant 0 : i32
    %c0_i32_1 = arith.constant 0 : i32
    return %c0_i32, %c0_i32_0 : i32, i32
  }
  func.func @transform_6(%arg0: i32) -> (i32, i32) {
    %c0_i32 = arith.constant 0 : i32
    %c0_i32_0 = arith.constant 0 : i32
    %c0_i32_1 = arith.constant 0 : i32
    return %c0_i32, %c0_i32_0 : i32, i32
  }
  func.func @transform_7(%arg0: i32) -> (i32, i32) {
    %c0_i32 = arith.constant 0 : i32
    %c0_i32_0 = arith.constant 0 : i32
    return %arg0, %c0_i32 : i32, i32
  }
}

</mosaic_0001>

<bundles_post_ra>
// kernel: tpu_custom_call.1
= control target key start
LH: loop header
LB: loop body
LE: loop exit
PB: predicated region body
PF: predicated region fallthrough
CT: control target
= control target key end

     0   :  { %12 = vsyncpa [#allocation3], 0  ;;  %s1464_s0 = inlined_call_operand.vmem [shape: bf16[128,25], index: 0, kind: input, shape index: {}]   ;;  %s1465_s1 = inlined_call_operand.vmem [shape: bf16[25,128], index: 1, kind: input, shape index: {}]   ;;  %s1466_s2 = inlined_call_operand.vmem [shape: f32[1,128], index: 2, kind: input, shape index: {}]   ;;  %s1467_s3 = inlined_call_operand.vmem [shape: bf16[128,128], index: 3, kind: input, shape index: {}]   ;;  %s1468_s4 = inlined_call_operand.vmem [shape: f32[1,128], index: 4, kind: input, shape index: {}]   ;;  %s1469_s5 = inlined_call_operand.hbm [shape: bf16[128,128], index: 5, kind: input, shape index: {}]   ;;  %s1470_s6 = inlined_call_operand.vmem [shape: f32[1,128], index: 6, kind: input, shape index: {}]   ;;  %s1471_s7 = inlined_call_operand.hbm [shape: bf16[128,128], index: 7, kind: output, shape index: {}]  }
   0x1   :  { %13 = vsyncpa [#allocation4], 0 }
   0x2   :  { %15 = vsyncpa [#allocation4 + $0x1], 0  ;;  %s1280_s24 = smov 0   ;;  %s1282_s25 = smov 0  }
   0x3   :  { %s1284_s26 = smov 0   ;;  %s1286_s27 = smov 0  }
   0x4 LB: > { %s1301_s28 = sadd.s32 4294967295, %s1231_s27   ;;  %s887_s29 = sadd.s32 4294967294, %s1231_s27   ;;  %s1231_s27 = sphi %s1286_s27, %s1487_s27   ;;  %s1227_s26 = sphi %s1284_s26, %s1486_s26   ;;  %s1223_s25 = sphi %s1282_s25, %s1485_s25   ;;  %s1219_s24 = sphi %s1280_s24, %s1484_s24  }
   0x5   : > { %s1305_s30 = sadd.s32 1, %s1231_s27   ;;  %s180_s8 = sadd.s32 1, %s1227_s26 }
   0x6   : > { %s177_s9 = ssub.s32 %s1231_s27, %s1305_s30  ;;  %p190_p0 = scmp.ne.s32.totalorder %s1227_s26, %s1223_s25 }
   0x7   : > { %p178_p1 = scmp.eq.s32.totalorder %s177_s9, 0  ;;  %p191_p2 = scmp.eq.s32.totalorder %s1301_s28, 1 }
   0x8   : > { %p196_p3 = scmp.ne.s32.totalorder %s1223_s25, %s1219_s24  ;;  %p197_p4 = scmp.eq.s32.totalorder %s887_s29, 1 }
   0x9   : > { %s1316_s10 = scalar_select %p178_p1, %s1227_s26, %s180_s8  }
   0xa   : > { %p1318_p5 = por %p191_p2, %p190_p0  ;;  %p1322_p6 = por %p197_p4, %p196_p3 }
   0xb   : > { %p888_p7 = scmp.ge.s32.totalorder %s1231_s27, 1  ;;  %p204_p8 = scmp.lt.s32.totalorder %s1231_s27, 3 }
   0xc   : > { %s1475_s11 = scalar_select %p1318_p5, 1, 0 }
   0xd   : > { %s1476_s12 = scalar_select %p1322_p6, 1, 0 }
   0xe   : > { %p1472_p9 = scmp.eq.s32.totalorder %s1301_s28, 0  ;;  %p1329_p10 = pnand %p888_p7, %p204_p8 }
   0xf   : > { %s1233_s14 = smov [#allocation2]   ;;  %s1137_s19 = scalar_lea.hbm %s1469_s5, 1024 }
  0x10   : > { %s1477_s13 = scalar_select %p1329_p10, 1, 0 }
  0x11   : > { %s228_s15 = sshll.u32 %s1233_s14, 4  ;;  %p1066_p11 = pneg %p1329_p10  ;;  %s229_s15 = int_to_ptr.vmem [resolvable:$true] %s228_s15 }
  0x12   : > { %p1138_p13 = scmp.ne.s32.totalorder %s1469_s5, %s1137_s19  ;;  %p1144_p3 = scmp.lt.u32.totalorder %s1137_s19, %s1469_s5 }
  0x13   : > { %p1337_p12 = pnand %p1472_p9, %p1066_p11 }
  0x15   : > { %p1139_p0 = pneg %p1337_p12 }
  0x17   : > { %p1140_p1 = pnand %p1139_p0, %p1138_p13 }
  0x19   : > { %p1141_p2 = pneg %p1140_p1 }
  0x1b   : > { %p1146_p4 = pnand %p1144_p3, %p1141_p2 }
  0x1d   : > { %1149 = shalt.err (!%p1146_p4)
}
  0x1e   : > { %s1150_s29 = scalar_lea.vmem %s229_s15, 1024  ;;  %p1158_p9 = scmp.lt.s32.totalorder %s229_s15, %s229_s15 }
  0x1f   : > { %p1151_p7 = scmp.ne.s32.totalorder %s229_s15, %s1150_s29  ;;  %p1159_p6 = scmp.lt.s32.totalorder %s1150_s29, %s1150_s29 }
  0x21   : > { %p1153_p8 = pnand %p1151_p7, %p1139_p0  ;;  %p1160_p5 = por %p1159_p6, %p1158_p9 }
  0x23   : > { %p1154_p11 = pneg %p1153_p8 }
  0x25   : > { %p1161_p10 = pnand %p1160_p5, %p1154_p11 }
  0x27   : > { %1164 = shalt.err (!%p1161_p10)
}
  0x28   : > { %s1234_s8 = smov 64   ;;  %s1235_s9 = smov 4  }
  0x29   : > { %1069 = dma.hbm_to_vmem [thread:$0]  (!%p1337_p12), %s1469_s5, 1024, %s229_s15, [#allocation3], %s1234_s8, %s1234_s8, %s1235_s9  }
  0x2a   : > { %p1479_p13 = scmp.ne.s32.totalorder %s1477_s13, 0 }
  0x2b   : > { %p1480_p1 = scmp.eq.s32.totalorder (!%p1479_p13), %s1301_s28, 0 }
  0x2c   : > { %256 = sbr.rel (%p1479_p13) target bundleno = 749 (0x2ed), region = 48 }
  0x33   : > { %1210 = dma.done.wait (%p1480_p1), [#allocation3], 1024   ;;  %p1481_p0 = pmov %p1480_p1 }
  0x34   : > { %s894_s18 = sshll.u32 %s1301_s28, 3  ;;  %vm359_vm0 = vcmask 1043456   ;;  %vm360_vm1 = vcmask 1044480   ;;  %v1236_v0 = vmov 65535   ;;  %vm346_vm2 = vcmask 203776   ;;  %v1115_v2 = vld [vmem:[%s1465_s1] sm:$0xff]  }
  0x35   : > { %1212 = vsyncadd (%p1481_p0), [#allocation3], 4294966272  ;;  %p289_p5 = scmp.lt.s32.totalorder %s894_s18, 15  ;;  %v361_v1 = vsel %vm359_vm0, 4294967295, %v1236_v0  ;;  %v1116_v4 = vld [vmem:[%s1465_s1 + $0x8] sm:$0x1f]   ;;  %1000 = vmatprep.subr.bf16.mxu0 %v1115_v2 }
  0x36   : > { %v362_v3 = vsel %vm360_vm1, %v361_v1, 0  ;;  %1001 = vmatpush3.bf16.msra.mxu0 %v1115_v2  ;;  %v1121_v9 = vld [vmem:[%s1467_s3] sm:$0xff]   ;;  %v1122_v10 = vld [vmem:[%s1467_s3 + $0x8] sm:$0xff]   ;;  %v1123_v11 = vld [vmem:[%s1467_s3 + $0x10] sm:$0xff]   ;;  %p1482_p9 = scmp.ne.s32.totalorder %s1475_s11, 0  ;;  %s1237_s14 = smov [#allocation5]  }
  0x37   : > { %s1489_s18 = smov (!%p289_p5, %s894_s18), 15  ;;  %v364_v6 = vand.u32 %v1116_v4, %v362_v3  ;;  %1012 = vmatprep.subr.bf16.mxu1 %v1121_v9  ;;  %v1124_v13 = vld [vmem:[%s1467_s3 + $0x18] sm:$0xff]   ;;  %v1125_v14 = vld [vmem:[%s1467_s3 + $0x20] sm:$0xff]   ;;  %v1126_v15 = vld [vmem:[%s1467_s3 + $0x28] sm:$0xff]   ;;  %s1169_s17 = sshll.u32 %s1237_s14, 4  ;;  %s1170_s17 = int_to_ptr.vmem [resolvable:$false] %s1169_s17 }
  0x38   : > { %s895_s16 = sshll.u32 %s1489_s18, 2  ;;  %1013 = vmatpush3.bf16.msra.mxu1 %v1121_v9  ;;  %v1127_v16 = vld [vmem:[%s1467_s3 + $0x30] sm:$0xff]   ;;  %v1128_v17 = vld [vmem:[%s1467_s3 + $0x38] sm:$0xff]   ;;  %v1129_v18 = vld [vmem:[#allocation2] sm:$0xff]   ;;  %s1171_s18 = scalar_lea.vmem %s1170_s17, 1024 }
  0x39   : > { %s292_s13 = scalar_lea.vmem %s1464_s0, %s895_s16  ;;  %1002 = vmatprep.subr.bf16.mxu0 %v364_v6  ;;  %1014 = vmatprep.subr.bf16.mxu1 %v1122_v10  ;;  %v1130_v19 = vld [vmem:[#allocation2 + $0x8] sm:$0xff]   ;;  %v1131_v20 = vld [vmem:[#allocation2 + $0x10] sm:$0xff]   ;;  %v1132_v21 = vld [vmem:[#allocation2 + $0x18] sm:$0xff]   ;;  %s285_s16 = sand.u32 1, %s1223_s25  }
  0x3a   : > { %v1117_v5 = vld [vmem:[%s292_s13] sm:$0xff]   ;;  %v1118_v7 = vld [vmem:[%s292_s13 + $0x8] sm:$0xff]   ;;  %v1119_v8 = vld [vmem:[%s292_s13 + $0x10] sm:$0xff]   ;;  %1003 = vmatpush3.bf16.msra.mxu0 %v364_v6  ;;  %s893_s20 = sshll.u32 %s285_s16, 5 }
  0x3b   : > { %1004 = vmatprep.mubr.msk.bf16.mxu0 %vm346_vm2, %v1117_v5  ;;  %v1120_v12 = vld [vmem:[%s292_s13 + $0x18] sm:$0xff]   ;;  %1036 = vmatprep.subr.bf16.mxu0 %v1129_v18  ;;  %v1133_v22 = vld [vmem:[#allocation2 + $0x20] sm:$0xff]   ;;  %v1134_v60 = vld [vmem:[#allocation2 + $0x28] sm:$0xff]   ;;  %s287_s21 = scalar_lea.vmem [#allocation5], %s893_s20  ;;  %s946_s13 = sshll.u32 %s1301_s28, 9 }
  0x3c   : > { %1015 = vmatpush3.bf16.msra.mxu1 %v1122_v10  ;;  %v896_v23 = vld [vmem:[%s1466_s2] ss:$0 sm:$0xff]  ;;  %v1135_v61 = vld [vmem:[#allocation2 + $0x30] sm:$0xff]   ;;  %v1136_v62 = vld [vmem:[#allocation2 + $0x38] sm:$0xff]   ;;  %s813_s22 = sshll.u32 %s287_s21, 4  ;;  %s1419_s8 = scalar_lea.hbm %s1471_s7, %s946_s13  ;;  %s1414_s22 = int_to_ptr.vmem [resolvable:$true] %s813_s22 }
  0x3d   : > { %1005 = vmatmul.mubr.msk.bf16.vlgmr.msra.gmra.mrb[0].mxu0 %vm346_vm2, %v1118_v7  ;;  %1016 = vmatprep.subr.bf16.mxu1 %v1123_v11  ;;  %v907_v63 = vld [vmem:[%s1468_s4] ss:$0 sm:$0xff]  ;;  %s1423_s28 = scalar_lea.sflag [#allocation4], %s285_s16  ;;  %s1165_s9 = scalar_lea.vmem %s1414_s22, 512 }
  0x3e   : > { %1008 = vmatprep.mubr.msk.bf16.mxu0 %vm346_vm2, %v1119_v8  ;;  %1037 = vmatpush3.bf16.msra.mxu0 %v1129_v18  ;;  %p1166_p6 = scmp.ne.s32.totalorder %s1414_s22, %s1165_s9  ;;  %p1172_p2 = scmp.lt.s32.totalorder %s1414_s22, %s1170_s17 }
  0x3f   : > { %1038 = vmatprep.subr.bf16.mxu0 %v1130_v19  ;;  %p1173_p3 = scmp.lt.s32.totalorder %s1171_s18, %s1165_s9 }
  0x40   : > { %1017 = vmatpush3.bf16.msra.mxu1 %v1123_v11  ;;  %p1167_p10 = pnand %p1166_p6, %p1482_p9 }
  0x41   : > { %1018 = vmatprep.subr.bf16.mxu1 %v1124_v13  ;;  %p1174_p4 = por %p1173_p3, %p1172_p2 }
  0x42   : > { %1039 = vmatpush3.bf16.msra.mxu0 %v1130_v19  ;;  %p1168_p12 = pneg %p1167_p10 }
  0x43   : > { %1040 = vmatprep.subr.bf16.mxu0 %v1131_v20 }
  0x44   : > { %1019 = vmatpush3.bf16.msra.mxu1 %v1124_v13  ;;  %p1175_p7 = pnand %p1174_p4, %p1168_p12 }
  0x45   : > { %1009 = vmatmul.mubr.msk.bf16.gmra.mrb[4].mxu0 %vm346_vm2, %v1120_v12  ;;  %1020 = vmatprep.subr.bf16.mxu1 %v1125_v14 }
  0x46   : > { %1041 = vmatpush3.bf16.msra.mxu0 %v1131_v20 }
  0x47   : > { %1042 = vmatprep.subr.bf16.mxu0 %v1132_v21 }
  0x48   : > { %1021 = vmatpush3.bf16.msra.mxu1 %v1125_v14 }
  0x49   : > { %1022 = vmatprep.subr.bf16.mxu1 %v1126_v15 }
  0x4a   : > { %1043 = vmatpush3.bf16.msra.mxu0 %v1132_v21 }
  0x4b   : > { %1044 = vmatprep.subr.bf16.mxu0 %v1133_v22 }
  0x4c   : > { %1023 = vmatpush3.bf16.msra.mxu1 %v1126_v15 }
  0x4d   : > { %1024 = vmatprep.subr.bf16.mxu1 %v1127_v16 }
  0x4e   : > { %1045 = vmatpush3.bf16.msra.mxu0 %v1133_v22 }
  0x4f   : > { %1046 = vmatprep.subr.bf16.mxu0 %v1134_v60 }
  0x50   : > { %1025 = vmatpush3.bf16.msra.mxu1 %v1127_v16 }
  0x51   : > { %1026 = vmatprep.subr.bf16.mxu1 %v1128_v17 }
  0x52   : > { %1047 = vmatpush3.bf16.msra.mxu0 %v1134_v60 }
  0x53   : > { %1048 = vmatprep.subr.bf16.mxu0 %v1135_v61 }
  0x54   : > { %1027 = vmatpush3.bf16.msra.mxu1 %v1128_v17 }
  0x56   : > { %1049 = vmatpush3.bf16.msra.mxu0 %v1135_v61 }
  0x57   : > { %1050 = vmatprep.subr.bf16.mxu0 %v1136_v62 }
  0x5a   : > { %1051 = vmatpush3.bf16.msra.mxu0 %v1136_v62 }
 0x110   : > { %v1006_v24 = vpop.f32.mrb[0].mxu0 }
 0x111   : > { %v409_v25 = vadd.f32 %v1006_v24, %v896_v23  ;;  %v400_v26 = vpop.f32.mrb[1].mxu0 }
 0x112   : > { %v401_v27 = vadd.f32 %v896_v23, %v400_v26  ;;  %v1007_v28 = vpop.f32.mrb[2].mxu0 }
 0x113   : > { %v441_v29 = vmul.f32 0.01, %v409_v25  ;;  %v412_v30 = vadd.f32 %v1007_v28, %v896_v23  ;;  %v403_v31 = vpop.f32.mrb[3].mxu0  ;;  %vm433_vm3 = vcmp.gt.f32.partialorder %v409_v25, 0.0 }
 0x114   : > { %v439_v32 = vmul.f32 0.01, %v401_v27  ;;  %v404_v33 = vadd.f32 %v896_v23, %v403_v31  ;;  %vm431_vm5 = vcmp.gt.f32.partialorder %v401_v27, 0.0 }
 0x115   : > { %vm434_vm4 = vcmp.gt.f32.partialorder %v412_v30, 0.0  ;;  %v442_v34 = vmul.f32 0.01, %v412_v30  ;;  %v449_v36 = vsel %vm433_vm3, %v409_v25, %v441_v29 }
 0x116   : > { %v440_v35 = vmul.f32 0.01, %v404_v33  ;;  %vm432_vm6 = vcmp.gt.f32.partialorder %v404_v33, 0.0  ;;  %v447_v39 = vsel %vm431_vm5, %v401_v27, %v439_v32 }
 0x117   : > { %v450_v37 = vsel %vm434_vm4, %v412_v30, %v442_v34 }
 0x118   : > { %v1010_v38 = vpop.f32.mrb[4].mxu0  ;;  %v448_v40 = vsel %vm432_vm6, %v404_v33, %v440_v35  ;;  %v456_v41 = vpack.c.bf16 %v450_v37, %v449_v36  ;;  %v916_v37 = vld [vmem:[%s1470_s6] ss:$0 sm:$0xff] }
 0x119   : > { %v425_v42 = vadd.f32 %v1010_v38, %v896_v23  ;;  %v416_v43 = vpop.f32.mrb[5].mxu0  ;;  %v455_v44 = vpack.c.bf16 %v448_v40, %v447_v39 }
 0x11a   : > { %v417_v45 = vadd.f32 %v896_v23, %v416_v43  ;;  %v1011_v46 = vpop.f32.mrb[6].mxu0 }
 0x11b   : > { %v445_v47 = vmul.f32 0.01, %v425_v42  ;;  %v428_v48 = vadd.f32 %v1011_v46, %v896_v23  ;;  %v419_v49 = vpop.f32.mrb[7].mxu0  ;;  %1028 = vmatprep.mubr.bf16.mxu1 %v455_v44  ;;  %vm437_vm7 = vcmp.gt.f32.partialorder %v425_v42, 0.0 }
 0x11c   : > { %v443_v50 = vmul.f32 0.01, %v417_v45  ;;  %v420_v51 = vadd.f32 %v896_v23, %v419_v49  ;;  %1029 = vmatmul.mubr.bf16.vlgmr.msra.gmra.mrb[0].mxu1 %v456_v41  ;;  %vm435_vm8 = vcmp.gt.f32.partialorder %v417_v45, 0.0 }
 0x11d   : > { %vm438_vm9 = vcmp.gt.f32.partialorder %v428_v48, 0.0  ;;  %v446_v52 = vmul.f32 0.01, %v428_v48  ;;  %v453_v54 = vsel %vm437_vm7, %v425_v42, %v445_v47 }
 0x11e   : > { %vm436_vm10 = vcmp.gt.f32.partialorder %v420_v51, 0.0  ;;  %v444_v53 = vmul.f32 0.01, %v420_v51  ;;  %v451_v56 = vsel %vm435_vm8, %v417_v45, %v443_v50 }
 0x11f   : > { %v454_v55 = vsel %vm438_vm9, %v428_v48, %v446_v52 }
 0x120   : > { %v452_v57 = vsel %vm436_vm10, %v420_v51, %v444_v53  ;;  %v458_v58 = vpack.c.bf16 %v454_v55, %v453_v54 }
 0x121   : > { %v457_v59 = vpack.c.bf16 %v452_v57, %v451_v56 }
 0x123   : > { %1032 = vmatprep.mubr.bf16.mxu1 %v457_v59 }
 0x124   : > { %1033 = vmatmul.mubr.bf16.gmra.mrb[4].mxu1 %v458_v58 }
 0x1ef   : > { %v1030_v0 = vpop.f32.mrb[0].mxu1 }
 0x1f0   : > { %v573_v1 = vadd.f32 %v1030_v0, %v907_v63  ;;  %v564_v2 = vpop.f32.mrb[1].mxu1 }
 0x1f1   : > { %v565_v3 = vadd.f32 %v907_v63, %v564_v2  ;;  %v1031_v4 = vpop.f32.mrb[2].mxu1 }
 0x1f2   : > { %v605_v5 = vmul.f32 0.01, %v573_v1  ;;  %v576_v6 = vadd.f32 %v1031_v4, %v907_v63  ;;  %v567_v7 = vpop.f32.mrb[3].mxu1  ;;  %vm597_vm11 = vcmp.gt.f32.partialorder %v573_v1, 0.0 }
 0x1f3   : > { %v603_v8 = vmul.f32 0.01, %v565_v3  ;;  %v568_v9 = vadd.f32 %v907_v63, %v567_v7  ;;  %vm595_vm12 = vcmp.gt.f32.partialorder %v565_v3, 0.0 }
 0x1f4   : > { %vm598_vm13 = vcmp.gt.f32.partialorder %v576_v6, 0.0  ;;  %v606_v10 = vmul.f32 0.01, %v576_v6  ;;  %v613_v12 = vsel %vm597_vm11, %v573_v1, %v605_v5 }
 0x1f5   : > { %vm596_vm14 = vcmp.gt.f32.partialorder %v568_v9, 0.0  ;;  %v604_v11 = vmul.f32 0.01, %v568_v9  ;;  %v611_v16 = vsel %vm595_vm12, %v565_v3, %v603_v8 }
 0x1f6   : > { %v614_v13 = vsel %vm598_vm13, %v576_v6, %v606_v10 }
 0x1f7   : > { %v620_v14 = vpack.c.bf16 %v614_v13, %v613_v12  ;;  %v1034_v15 = vpop.f32.mrb[4].mxu1  ;;  %v612_v17 = vsel %vm596_vm14, %v568_v9, %v604_v11 }
 0x1f8   : > { %v589_v18 = vadd.f32 %v1034_v15, %v907_v63  ;;  %v580_v19 = vpop.f32.mrb[5].mxu1  ;;  %v619_v20 = vpack.c.bf16 %v612_v17, %v611_v16 }
 0x1f9   : > { %v581_v21 = vadd.f32 %v907_v63, %v580_v19  ;;  %v1035_v22 = vpop.f32.mrb[6].mxu1 }
 0x1fa   : > { %v609_v23 = vmul.f32 0.01, %v589_v18  ;;  %v592_v24 = vadd.f32 %v1035_v22, %v907_v63  ;;  %v583_v25 = vpop.f32.mrb[7].mxu1  ;;  %1052 = vmatprep.mubr.bf16.mxu0 %v619_v20  ;;  %vm601_vm15 = vcmp.gt.f32.partialorder %v589_v18, 0.0 }
 0x1fb   : > { %v607_v26 = vmul.f32 0.01, %v581_v21  ;;  %v584_v27 = vadd.f32 %v907_v63, %v583_v25  ;;  %1053 = vmatmul.mubr.bf16.vlgmr.msra.gmra.mrb[8].mxu0 %v620_v14  ;;  %vm599_vm0 = vcmp.gt.f32.partialorder %v581_v21, 0.0 }
 0x1fc   : > { %vm602_vm1 = vcmp.gt.f32.partialorder %v592_v24, 0.0  ;;  %v610_v28 = vmul.f32 0.01, %v592_v24  ;;  %v617_v30 = vsel %vm601_vm15, %v589_v18, %v609_v23 }
 0x1fd   : > { %vm600_vm2 = vcmp.gt.f32.partialorder %v584_v27, 0.0  ;;  %v608_v29 = vmul.f32 0.01, %v584_v27  ;;  %v615_v32 = vsel %vm599_vm0, %v581_v21, %v607_v26 }
 0x1fe   : > { %v618_v31 = vsel %vm602_vm1, %v592_v24, %v610_v28 }
 0x1ff   : > { %v616_v33 = vsel %vm600_vm2, %v584_v27, %v608_v29  ;;  %v622_v34 = vpack.c.bf16 %v618_v31, %v617_v30 }
 0x200   : > { %v621_v35 = vpack.c.bf16 %v616_v33, %v615_v32 }
 0x202   : > { %1056 = vmatprep.mubr.bf16.mxu0 %v621_v35 }
 0x203   : > { %1057 = vmatmul.mubr.bf16.gmra.mrb[12].mxu0 %v622_v34 }
 0x2ce   : > { %v1054_v36 = vpop.f32.mrb[8].mxu0 }
 0x2cf   : > { %v728_v38 = vpop.f32.mrb[9].mxu0  ;;  %v737_v40 = vadd.f32 %v1054_v36, %v916_v37 }
 0x2d0   : > { %v1055_v39 = vpop.f32.mrb[10].mxu0  ;;  %v729_v43 = vadd.f32 %v916_v37, %v728_v38 }
 0x2d1   : > { %v740_v41 = vadd.f32 %v1055_v39, %v916_v37  ;;  %v731_v42 = vpop.f32.mrb[11].mxu0 }
 0x2d2   : > { %v732_v44 = vadd.f32 %v916_v37, %v731_v42 }
 0x2d3   : > { %v955_v45 = vpack.c.bf16 %v740_v41, %v737_v40 }
 0x2d4   : > { %v950_v46 = vpack.c.bf16 %v732_v44, %v729_v43 }
 0x2d5   : > { %967 = vst [vmem:[%s287_s21 + $0x8] sm:$0xff] %v955_v45  }
 0x2d6   : > { %951 = vst [vmem:[%s287_s21] sm:$0xff] %v950_v46   ;;  %v1058_v47 = vpop.f32.mrb[12].mxu0 }
 0x2d7   : > { %v744_v48 = vpop.f32.mrb[13].mxu0  ;;  %v753_v50 = vadd.f32 %v1058_v47, %v916_v37 }
 0x2d8   : > { %v1059_v49 = vpop.f32.mrb[14].mxu0  ;;  %v745_v53 = vadd.f32 %v916_v37, %v744_v48 }
 0x2d9   : > { %v756_v51 = vadd.f32 %v1059_v49, %v916_v37  ;;  %v747_v52 = vpop.f32.mrb[15].mxu0 }
 0x2da   : > { %v748_v54 = vadd.f32 %v916_v37, %v747_v52 }
 0x2db   : > { %v965_v55 = vpack.c.bf16 %v756_v51, %v753_v50 }
 0x2dc   : > { %v960_v56 = vpack.c.bf16 %v748_v54, %v745_v53 }
 0x2dd   : > { %969 = vst [vmem:[%s287_s21 + $0x18] sm:$0xff] %v965_v55  }
 0x2de   : > { %968 = vst [vmem:[%s287_s21 + $0x10] sm:$0xff] %v960_v56  }
 0x2df   : > { %1178 = shalt.err (!%p1175_p7)
}
 0x2e0   : > { %s1179_s16 = scalar_lea.hbm %s1419_s8, 512  ;;  %s1183_s20 = scalar_lea.hbm %s1471_s7, 1024 }
 0x2e1   : > { %p1180_p8 = scmp.ne.s32.totalorder %s1419_s8, %s1179_s16  ;;  %p1184_p1 = scmp.lt.u32.totalorder %s1419_s8, %s1471_s7 }
 0x2e2   : > { %p1185_p0 = scmp.lt.u32.totalorder %s1183_s20, %s1179_s16  ;;  %p1187_p6 = scmp.lt.u32.totalorder %s1179_s16, %s1419_s8 }
 0x2e3   : > { %p1181_p11 = pnand %p1180_p8, %p1482_p9 }
 0x2e4   : > { %p1186_p5 = por %p1185_p0, %p1184_p1 }
 0x2e5   : > { %p1182_p13 = pneg %p1181_p11 }
 0x2e6   : > { %p1188_p10 = por %p1187_p6, %p1186_p5 }
 0x2e8   : > { %p1189_p12 = pnand %p1188_p10, %p1182_p13 }
 0x2ea   : > { %1192 = shalt.err (!%p1189_p12)
}
 0x2eb   : > { %s1238_s23 = smov 64   ;;  %s1239_s29 = smov 4  }
 0x2ec   : > { %1064 = dma.vmem_to_hbm [thread:$0]  (%p1482_p9), %s1414_s22, 512, %s1419_s8, %s1423_s28, %s1238_s23, %s1238_s23, %s1239_s29  }
 0x2ed PF: > { %p1076_p2 = scmp.ge.s32.totalorder %s1231_s27, 2  ;;  %s828_s9 = sand.u32 1, %s1219_s24  }
 0x2ee   : > { %p1483_p3 = scmp.ne.s32.totalorder %s1476_s12, 0  ;;  %s829_s14 = scalar_lea.sflag [#allocation4], %s828_s9 }
 0x2f0   : > { %p1071_p4 = pnand %p1076_p2, %p1483_p3 }
 0x2f2   : > { %1214 = dma.done.wait (!%p1071_p4), %s829_s14, 512  }
 0x2f3   : > { %1216 = vsyncadd (!%p1071_p4), %s829_s14, 4294966784  ;;  %p18_p7 = scmp.ge.s32.totalorder %s1305_s30, 4   ;;  %s1484_s24 = smov %s1223_s25 }
 0x2f4   : > { %s1485_s25 = smov %s1227_s26  ;;  %s1486_s26 = smov %s1316_s10 }
 0x2f5   : > { %s1487_s27 = smov %s1305_s30  ;;  %20 = sbr.rel (!%p18_p7) target bundleno = 4 (0x4), region = 88 }
 0x2fc   :  { %834 = vsyncpa [#allocation3], 1 }
 0x2fd   :  { %836 = vsyncpa [#allocation3 + $0x1], 1 }
 0x2fe   :  { %837 = vsyncpa [#allocation4], 1 }
 0x2ff   :  { %839 = vsyncpa [#allocation4 + $0x1], 1 }

</bundles_post_ra>
